<compile_context>
chip_gen: v7x
topology: tpu7x:2x2x1
jax: 0.10.0
libtpu: 0.0.40
codegen_flags: <defaults>
</compile_context>

<pallas_src>
import functools

import jax
import jax.numpy as jnp
from jax.experimental import pallas as pl
from jax.experimental.pallas import tpu as pltpu


def _pos_emb_copy_kernel(wpe_hbm_ref, out_hbm_ref, copy_sems, *, chunk_bounds):
    """Copy wpe[:seq_len, :] -> out via one or more concurrent HBM->HBM DMAs.

    wpe_hbm_ref:  (max_seq_len, d_model) embedding table, left in HBM.
    out_hbm_ref:  (seq_len, d_model) output, left in HBM.
    copy_sems:    DMA semaphores, one per chunk.
    chunk_bounds: static tuple of (row_start, row_count) per chunk.
    """
    copies = []
    for c, (start, rows) in enumerate(chunk_bounds):
        cp = pltpu.make_async_copy(
            wpe_hbm_ref.at[pl.ds(start, rows), :],
            out_hbm_ref.at[pl.ds(start, rows), :],
            copy_sems.at[c],
        )
        cp.start()
        copies.append(cp)
    # All chunks are in flight before the first wait -> N concurrent DMA streams.
    for cp in copies:
        cp.wait()


def learnable_positional_encoding(x, wpe, *, max_dma_chunks=4):
    """Pallas equivalent of LearnablePositionalEncoding.forward.

    x:   (batch, seq_len) integer token ids — only the shape is used.
    wpe: (max_seq_len, d_model) learnable position-embedding table.
    Returns (seq_len, d_model) = wpe[:seq_len], matching the PyTorch module.

    NOTE: in a full model, prefer `wpe[:seq_len]` in plain JAX and let XLA fuse
    the prefix slice into the consumer — this kernel exists to demonstrate the
    optimal standalone-kernel structure for the op.
    """
    batch_size, seq_len = x.shape
    max_seq_len, d_model = wpe.shape
    assert seq_len <= max_seq_len, (
        f"Cannot forward sequence of length {seq_len}, max_seq_len is {max_seq_len}")

    itemsize = jnp.dtype(wpe.dtype).itemsize
    copy_bytes = seq_len * d_model * itemsize

    # Small slab: one DMA (descriptor setup dominates, chunking only adds cost).
    # Large slab: several concurrent DMA streams to approach HBM BW on v6e/v7x.
    if copy_bytes < (1 << 20):
        num_chunks = 1
    else:
        num_chunks = min(max_dma_chunks, seq_len)

    rows_per_chunk = -(-seq_len // num_chunks)  # ceil-div
    chunk_bounds = []
    row = 0
    while row < seq_len:
        rows = min(rows_per_chunk, seq_len - row)
        chunk_bounds.append((row, rows))
        row += rows
    num_chunks = len(chunk_bounds)

    kernel = functools.partial(_pos_emb_copy_kernel,
                               chunk_bounds=tuple(chunk_bounds))

    return pl.pallas_call(
        kernel,
        out_shape=jax.ShapeDtypeStruct((seq_len, d_model), wpe.dtype),
        in_specs=[pl.BlockSpec(memory_space=pl.ANY)],   # keep table in HBM
        out_specs=pl.BlockSpec(memory_space=pl.ANY),    # write output directly in HBM
        scratch_shapes=[pltpu.SemaphoreType.DMA((num_chunks,))],
        cost_estimate=pl.CostEstimate(
            flops=0,
            transcendentals=0,
            bytes_accessed=2 * copy_bytes,
        ),
    )(wpe)


if __name__ == "__main__":
    key = jax.random.PRNGKey(0)
    k_wpe, k_x, k_wpe_big = jax.random.split(key, 3)

    # --- Small, module-consistent shapes (single-DMA path). -----------------
    batch_size = 2
    seq_len = 16
    d_model = 128
    max_seq_len = 64

    # Deterministic "learnable" table (nn.Embedding(max_seq_len, d_model).weight).
    wpe = jax.random.normal(k_wpe, (max_seq_len, d_model), dtype=jnp.float32)
    # Token ids; only their shape (batch, seq_len) matters for forward().
    x = jax.random.randint(k_x, (batch_size, seq_len), 0, 100, dtype=jnp.int32)

    out = jax.block_until_ready(learnable_positional_encoding(x, wpe))
    ref = wpe[jnp.arange(seq_len)]
    assert out.shape == (seq_len, d_model)
    assert out.dtype == jnp.float32
    assert jnp.allclose(out, ref), "Pallas output mismatch vs reference"

    # Ragged seq_len (not a multiple of 8) — no tiling restriction.
    seq_len2 = 13
    x2 = jax.random.randint(k_x, (batch_size, seq_len2), 0, 100, dtype=jnp.int32)
    out2 = jax.block_until_ready(learnable_positional_encoding(x2, wpe))
    assert jnp.allclose(out2, wpe[:seq_len2]), "Pallas output mismatch (ragged seq_len)"

    # --- Larger slab to exercise the chunked multi-DMA path (>= 1 MiB). -----
    max_seq_len_big, d_model_big, seq_len_big = 4096, 256, 2048  # 2 MiB f32 copy
    wpe_big = jax.random.normal(k_wpe_big, (max_seq_len_big, d_model_big),
                                dtype=jnp.float32)
    x_big = jnp.zeros((batch_size, seq_len_big), dtype=jnp.int32)
    out_big = jax.block_until_ready(learnable_positional_encoding(x_big, wpe_big))
    assert jnp.allclose(out_big, wpe_big[:seq_len_big]), \
        "Pallas output mismatch (chunked DMA path)"

    # TODO(synk): cross-call DMA-future variant (return the semaphore, wait in the
    # consumer kernel) is the next step when embedding the op in a full model.
    print("KERNEL_OK")
</pallas_src>

<mosaic_0001>
module attributes {stable_mosaic.version = 11 : i64} {
  func.func @_pos_emb_copy_kernel(%arg0: memref<64x128xf32, #tpu.memory_space<any>>, %arg1: memref<16x128xf32, #tpu.memory_space<any>>, %arg2: memref<1x!tpu.dma_semaphore, #tpu.memory_space<semaphore_mem>>) attributes {dimension_semantics = [], scalar_prefetch = 0 : i64, scratch_operands = 1 : i64, tpu.core_type = #tpu.core_type<tc>} {
    %c0_i32 = arith.constant 0 : i32
    %c0_i32_0 = arith.constant 0 : i32
    %c0_i32_1 = arith.constant 0 : i32
    %0 = tpu.memref_slice %arg0[%c0_i32_0, %c0_i32_1] : memref<64x128xf32, #tpu.memory_space<any>> -> memref<16x128xf32, #tpu.memory_space<any>>
    %c0_i32_2 = arith.constant 0 : i32
    %c0_i32_3 = arith.constant 0 : i32
    %1 = tpu.memref_slice %arg1[%c0_i32_2, %c0_i32_3] : memref<16x128xf32, #tpu.memory_space<any>> -> memref<16x128xf32, #tpu.memory_space<any>>
    %2 = tpu.memref_slice %arg2[%c0_i32] : memref<1x!tpu.dma_semaphore, #tpu.memory_space<semaphore_mem>> -> memref<1x!tpu.dma_semaphore, #tpu.memory_space<semaphore_mem>>
    %3 = tpu.memref_squeeze %2 : memref<1x!tpu.dma_semaphore, #tpu.memory_space<semaphore_mem>> -> memref<!tpu.dma_semaphore, #tpu.memory_space<semaphore_mem>>
    tpu.enqueue_dma source(%0 : memref<16x128xf32, #tpu.memory_space<any>>) target(%1 : memref<16x128xf32, #tpu.memory_space<any>>) target_semaphore(%3 : memref<!tpu.dma_semaphore, #tpu.memory_space<semaphore_mem>>)
    %c0_i32_4 = arith.constant 0 : i32
    %c0_i32_5 = arith.constant 0 : i32
    %c0_i32_6 = arith.constant 0 : i32
    %4 = tpu.memref_slice %arg0[%c0_i32_5, %c0_i32_6] : memref<64x128xf32, #tpu.memory_space<any>> -> memref<16x128xf32, #tpu.memory_space<any>>
    %c0_i32_7 = arith.constant 0 : i32
    %c0_i32_8 = arith.constant 0 : i32
    %5 = tpu.memref_slice %arg1[%c0_i32_7, %c0_i32_8] : memref<16x128xf32, #tpu.memory_space<any>> -> memref<16x128xf32, #tpu.memory_space<any>>
    %6 = tpu.memref_slice %arg2[%c0_i32_4] : memref<1x!tpu.dma_semaphore, #tpu.memory_space<semaphore_mem>> -> memref<1x!tpu.dma_semaphore, #tpu.memory_space<semaphore_mem>>
    %7 = tpu.memref_squeeze %6 : memref<1x!tpu.dma_semaphore, #tpu.memory_space<semaphore_mem>> -> memref<!tpu.dma_semaphore, #tpu.memory_space<semaphore_mem>>
    tpu.wait_dma2 semaphore(%7 : memref<!tpu.dma_semaphore, #tpu.memory_space<semaphore_mem>>) src(%4 : memref<16x128xf32, #tpu.memory_space<any>>) dst(%5 : memref<16x128xf32, #tpu.memory_space<any>>)
    return
  }
}

</mosaic_0001>

<bundles_post_ra>
// kernel: tpu_custom_call.1
= control target key start
LH: loop header
LB: loop body
LE: loop exit
PB: predicated region body
PF: predicated region fallthrough
CT: control target
= control target key end

     0   :  { %s34_s6 = smov [#allocation2]   ;;  %s35_s7 = smov [#allocation3]   ;;  %s53_s0 = inlined_call_operand.hbm [shape: f32[64,128], index: 0, kind: input, shape index: {}]   ;;  %s54_s1 = inlined_call_operand.hbm [shape: f32[16,128], index: 1, kind: output, shape index: {}]  }
   0x1   :  { %s36_s8 = smov 0  }
   0x2   :  { %18 = dma.general %s53_s0, 256, %s54_s1, %s34_s6, %s35_s7, [#allocation4], %s36_s8, 0  }
   0x3   :  { %32 = dma.done.wait [#allocation2], 256 }
   0x4   :  { %33 = vsyncadd [#allocation2], 4294967040 }
   0x5   :  { %22 = vsyncmov [#allocation2] }
   0x8   :  { %s23_s13 = vpop.sfrf %22 }
   0x9   :  { %p28_p0 = scmp.ne.s32.totalorder %s23_s13, 0 }
   0xb   :  { %27 = shalt.err (%p28_p0)  }

</bundles_post_ra>
